<compile_context>
chip_gen: v6e
topology: v6e:2x2x1
jax: 0.10.0
libtpu: 0.0.40
codegen_flags: <defaults>
</compile_context>

<pallas_src>
import math

import jax
import jax.numpy as jnp
from jax import lax
from jax.experimental import pallas as pl
from jax.experimental.pallas import tpu as pltpu


def _round_up(x, m):
    return ((x + m - 1) // m) * m


# ------------------------------- kernels -------------------------------------
def _mean_kernel(e_ref, wt_ref, b_ref, mean_ref):
    # mean tile = E_tile @ W^T + b  (bias broadcast over the batch sublanes)
    mean_ref[...] = (
        jnp.dot(e_ref[...], wt_ref[...], preferred_element_type=jnp.float32)
        + b_ref[...]
    )


def _cov_kernel(covp_ref, cov_ref):
    # cov = clamp(tril(C) @ tril(C)^T + 1e-8 * I, min=0)
    # Batch independent -> computed once, in its own tiny call.
    C = covp_ref[...]
    D = C.shape[0]
    rows = lax.broadcasted_iota(jnp.int32, (D, D), 0)
    cols = lax.broadcasted_iota(jnp.int32, (D, D), 1)
    L = jnp.where(cols <= rows, C, jnp.zeros_like(C))
    # Contract dim 1 against dim 1 so Mosaic folds the transpose into the MXU
    # operand layout instead of emitting an explicit XLU transpose of L.
    llt = lax.dot_general(
        L, L,
        dimension_numbers=(((1,), (1,)), ((), ())),
        preferred_element_type=jnp.float32,
    )
    jitter = jnp.where(rows == cols, jnp.float32(1e-8), jnp.float32(0.0))
    cov_ref[...] = jnp.maximum(llt + jitter, 0.0)


# ------------------------------- wrappers -------------------------------------
def prepare_params(weights, biases, data_dim):
    """One-time parameter preprocessing (hoisted out of the forward hot path).

    weights : list of (data_dim, dim_i) arrays (nn.Linear convention)
    biases  : list of (data_dim,) arrays
    Returns
      wt : (Dtot, Dp) f32 -- per-evidence weights transposed, stacked along the
           contraction axis, zero-padded on the output axis to a multiple of
           128 lanes so mean stores are lane-dense (unmasked vst).
      b  : (1, Dp) f32 -- summed biases, padded the same way.
    """
    wt = jnp.concatenate([w.astype(jnp.float32).T for w in weights], axis=0)
    b = jnp.sum(jnp.stack([bb.astype(jnp.float32) for bb in biases]), axis=0)[None, :]
    Dp = _round_up(data_dim, 128)
    if Dp != data_dim:
        wt = jnp.pad(wt, ((0, 0), (0, Dp - data_dim)))
        b = jnp.pad(b, ((0, 0), (0, Dp - data_dim)))
    return wt, b


def lgc_forward(evidence, wt, b, cov_param, data_dim, *, batch_tile=512):
    """LinearGaussianConditionalFn forward pass.

    evidence : list of (B, dim_i) float arrays
    wt, b    : preprocessed params from prepare_params()
    cov_param: (data_dim, data_dim) array (the `cov` parameter; init = eye)
    Returns (mean, cov): (B, data_dim), (data_dim, data_dim)
    """
    # TODO(synk): data_dim == 1 scalar-covariance branch (0-d parameter) not
    #             implemented; this kernel handles the matrix case (data_dim > 1).
    e = jnp.concatenate([ev.astype(jnp.float32) for ev in evidence], axis=-1)
    B, Dtot = e.shape
    Dp = wt.shape[1]

    # Batch tile: multiple of 8 sublanes, capped so double-buffered tiles stay
    # well under the v5e 16 MiB / v7x 32 MiB scoped-VMEM defaults.
    TB = min(batch_tile, _round_up(B, 8))
    Bp = _round_up(B, TB)
    if Bp != B:
        e = jnp.pad(e, ((0, Bp - B), (0, 0)))

    mean_padded = pl.pallas_call(
        _mean_kernel,
        out_shape=jax.ShapeDtypeStruct((Bp, Dp), jnp.float32),
        grid=(Bp // TB,),
        in_specs=[
            pl.BlockSpec((TB, Dtot), lambda i: (i, 0)),   # streamed over batch
            pl.BlockSpec((Dtot, Dp), lambda i: (0, 0)),   # resident weights
            pl.BlockSpec((1, Dp), lambda i: (0, 0)),      # resident bias
        ],
        out_specs=pl.BlockSpec((TB, Dp), lambda i: (i, 0)),
        compiler_params=pltpu.CompilerParams(
            dimension_semantics=("parallel",)),
        cost_estimate=pl.CostEstimate(
            flops=2 * Bp * Dtot * Dp,
            transcendentals=0,
            bytes_accessed=4 * (Bp * Dtot + Dtot * Dp + Dp + Bp * Dp)),
    )(e, wt, b)

    cov = pl.pallas_call(
        _cov_kernel,
        out_shape=jax.ShapeDtypeStruct((data_dim, data_dim), jnp.float32),
        grid=(),
        in_specs=[pl.BlockSpec((data_dim, data_dim), lambda: (0, 0))],
        out_specs=pl.BlockSpec((data_dim, data_dim), lambda: (0, 0)),
        cost_estimate=pl.CostEstimate(
            flops=2 * data_dim ** 3,
            transcendentals=0,
            bytes_accessed=4 * 2 * data_dim * data_dim),
    )(cov_param.astype(jnp.float32))

    mean = mean_padded[:B, :data_dim]
    return mean, cov


# --------------------------------- demo ---------------------------------------
if __name__ == "__main__":
    key = jax.random.PRNGKey(0)
    evidence_dims = [16, 32]
    data_dim = 32
    batch = 8

    # PyTorch nn.Linear-style init (uniform +-1/sqrt(fan_in)), deterministic.
    weights, biases = [], []
    for dim in evidence_dims:
        key, kw, kb = jax.random.split(key, 3)
        bound = 1.0 / math.sqrt(dim)
        weights.append(jax.random.uniform(kw, (data_dim, dim), jnp.float32,
                                          minval=-bound, maxval=bound))
        biases.append(jax.random.uniform(kb, (data_dim,), jnp.float32,
                                         minval=-bound, maxval=bound))
    cov_param = jnp.eye(data_dim, dtype=jnp.float32)

    # One-time parameter preprocessing, hoisted out of the forward hot path.
    wt, b = prepare_params(weights, biases, data_dim)

    kd = jax.random.split(jax.random.PRNGKey(0), len(evidence_dims) + 1)[1:]
    evidence = [jax.random.normal(kd[i], (batch, d), jnp.float32)
                for i, d in enumerate(evidence_dims)]

    mean, cov = lgc_forward(evidence, wt, b, cov_param, data_dim)
    jax.block_until_ready((mean, cov))

    # Reference check in plain JAX.
    mean_ref = sum(ev @ w.T + bb for ev, w, bb in zip(evidence, weights, biases))
    L = jnp.tril(cov_param)
    cov_ref = jnp.maximum(L @ L.T + 1e-8 * jnp.eye(data_dim), 0.0)
    assert jnp.allclose(mean, mean_ref, atol=1e-5), "mean mismatch"
    assert jnp.allclose(cov, cov_ref, atol=1e-6), "cov mismatch"

    print("KERNEL_OK")
</pallas_src>

<mosaic_0001>
module attributes {stable_mosaic.version = 11 : i64} {
  func.func @_mean_kernel(%arg0: i32, %arg1: memref<8x48xf32, #tpu.memory_space<vmem>>, %arg2: memref<48x128xf32, #tpu.memory_space<vmem>>, %arg3: memref<1x128xf32, #tpu.memory_space<vmem>>, %arg4: memref<8x128xf32, #tpu.memory_space<vmem>>) attributes {dimension_semantics = [#tpu.dimension_semantics<parallel>], iteration_bounds = array<i64: 1>, scalar_prefetch = 0 : i64, scratch_operands = 0 : i64, tpu.core_type = #tpu.core_type<tc>, window_params = [{transform_indices = @transform_0, window_bounds = array<i64: 8, 48>}, {pipeline_mode = #tpu.pipeline_mode<synchronous>, transform_indices = @transform_1, window_bounds = array<i64: 48, 128>}, {pipeline_mode = #tpu.pipeline_mode<synchronous>, transform_indices = @transform_2, window_bounds = array<i64: 1, 128>}, {transform_indices = @transform_3, window_bounds = array<i64: 8, 128>}]} {
    %c0 = arith.constant 0 : index
    %c0_0 = arith.constant 0 : index
    %0 = vector.load %arg1[%c0, %c0_0] : memref<8x48xf32, #tpu.memory_space<vmem>>, vector<8x48xf32>
    %c0_1 = arith.constant 0 : index
    %c0_2 = arith.constant 0 : index
    %1 = vector.load %arg2[%c0_1, %c0_2] : memref<48x128xf32, #tpu.memory_space<vmem>>, vector<48x128xf32>
    %cst = arith.constant dense<0.000000e+00> : vector<8x128xf32>
    %2 = tpu.matmul %0, %1, %cst {dimension_numbers = #tpu.dot_dimension_numbers<[1], [0], [0], [1], [0, 0, 1, 1], [], []>} : vector<8x48xf32>, vector<48x128xf32>, vector<8x128xf32> -> vector<8x128xf32>
    %c0_3 = arith.constant 0 : index
    %c0_4 = arith.constant 0 : index
    %3 = vector.load %arg3[%c0_3, %c0_4] : memref<1x128xf32, #tpu.memory_space<vmem>>, vector<1x128xf32>
    %4 = vector.broadcast %3 : vector<1x128xf32> to vector<8x128xf32>
    %5 = arith.addf %2, %4 : vector<8x128xf32>
    %c0_5 = arith.constant 0 : index
    %c0_6 = arith.constant 0 : index
    %6 = vector.load %arg4[%c0_5, %c0_6] : memref<8x128xf32, #tpu.memory_space<vmem>>, vector<8x128xf32>
    tpu.vector_store %arg4[%c0_5, %c0_6], %5 {strides = array<i32>} : memref<8x128xf32, #tpu.memory_space<vmem>>, vector<8x128xf32>,
    return
  }
  func.func @transform_0(%arg0: i32) -> (i32, i32) {
    %c0_i32 = arith.constant 0 : i32
    %c0_i32_0 = arith.constant 0 : i32
    return %arg0, %c0_i32 : i32, i32
  }
  func.func @transform_1(%arg0: i32) -> (i32, i32) {
    %c0_i32 = arith.constant 0 : i32
    %c0_i32_0 = arith.constant 0 : i32
    %c0_i32_1 = arith.constant 0 : i32
    return %c0_i32, %c0_i32_0 : i32, i32
  }
  func.func @transform_2(%arg0: i32) -> (i32, i32) {
    %c0_i32 = arith.constant 0 : i32
    %c0_i32_0 = arith.constant 0 : i32
    %c0_i32_1 = arith.constant 0 : i32
    return %c0_i32, %c0_i32_0 : i32, i32
  }
  func.func @transform_3(%arg0: i32) -> (i32, i32) {
    %c0_i32 = arith.constant 0 : i32
    %c0_i32_0 = arith.constant 0 : i32
    return %arg0, %c0_i32 : i32, i32
  }
}

</mosaic_0001>

<bundles_post_ra>
// kernel: tpu_custom_call.1
= control target key start
LH: loop header
LB: loop body
LE: loop exit
PB: predicated region body
PF: predicated region fallthrough
CT: control target
= control target key end

     0   :  { %8 = vsyncpa [#allocation3], 0  ;;  %s282_s0 = inlined_call_operand.hbm [shape: f32[8,48], index: 0, kind: input, shape index: {}]   ;;  %s283_s1 = inlined_call_operand.hbm [shape: f32[48,128], index: 1, kind: input, shape index: {}]   ;;  %s284_s2 = inlined_call_operand.vmem [shape: f32[1,128], index: 2, kind: input, shape index: {}]   ;;  %s285_s3 = inlined_call_operand.hbm [shape: f32[8,128], index: 3, kind: output, shape index: {}]  }
   0x1   :  { %9 = vsyncpa [#allocation6], 0 }
   0x2   :  { %10 = vsyncpa [#allocation4], 0  ;;  %s243_s12 = smov [#allocation2]   ;;  %s244_s14 = smov [#allocation5]  }
   0x3   :  { %s17_s13 = sshll.u32 %s243_s12, 4  ;;  %s26_s15 = sshll.u32 %s244_s14, 4  ;;  %s18_s13 = int_to_ptr.vmem [resolvable:$true] %s17_s13  ;;  %s27_s15 = int_to_ptr.vmem [resolvable:$true] %s26_s15 }
   0x4   :  { %s185_s16 = scalar_lea.vmem %s18_s13, 128  ;;  %p190_p1 = scmp.lt.s32.totalorder %s18_s13, %s18_s13 }
   0x5   :  { %p186_p0 = scmp.ne.s32.totalorder %s18_s13, %s185_s16  ;;  %p191_p2 = scmp.lt.s32.totalorder %s185_s16, %s185_s16 }
   0x7   :  { %p192_p3 = por %p191_p2, %p190_p1 }
   0x9   :  { %p193_p4 = pnand %p192_p3, %p186_p0 }
   0xb   :  { %196 = shalt.err (!%p193_p4)
}
   0xc   :  { %20 = dma.hbm_to_vmem [thread:$0]  %s282_s0, 128, %s18_s13, [#allocation3]  }
   0xd   :  { %s205_s19 = scalar_lea.vmem %s27_s15, 768  ;;  %p210_p6 = scmp.lt.s32.totalorder %s27_s15, %s27_s15 }
   0xe   :  { %p206_p5 = scmp.ne.s32.totalorder %s27_s15, %s205_s19  ;;  %p211_p7 = scmp.lt.s32.totalorder %s205_s19, %s205_s19 }
  0x10   :  { %p212_p8 = por %p211_p7, %p210_p6 }
  0x12   :  { %p213_p9 = pnand %p212_p8, %p206_p5 }
  0x14   :  { %216 = shalt.err (!%p213_p9)
}
  0x15   :  { %s245_s20 = smov 128   ;;  %s246_s21 = smov 8  }
  0x16   :  { %32 = dma.hbm_to_vmem [thread:$0]  %s283_s1, 768, %s27_s15, [#allocation6], %s245_s20, %s245_s20, %s246_s21  }
  0x17   :  { %237 = dma.done.wait [#allocation3], 128  }
  0x18   :  { %238 = vsyncadd [#allocation3], 4294967168 }
  0x19   :  { %239 = dma.done.wait [#allocation6], 768  }
  0x1a   :  { %240 = vsyncadd [#allocation6], 4294966528  ;;  %v247_v0 = vmov 0.0   ;;  %vm248_vm0 = vmmov 0   ;;  %v47_v1 = vld [vmem:[#allocation5 + $0x28] sm:$0xff]  ;;  %v46_v2 = vld [vmem:[#allocation5 + $0x20] sm:$0xff] }
  0x1b   :  { %155 = vmatprep.subr.mxu0 %v247_v0  ;;  %167 = vmatprep.mubr.msk.f32.mxu0 %vm248_vm0, %v247_v0  ;;  %v45_v3 = vld [vmem:[#allocation5 + $0x18] sm:$0xff]  ;;  %v44_v4 = vld [vmem:[#allocation5 + $0x10] sm:$0xff]  ;;  %v43_v5 = vld [vmem:[#allocation5 + $0x8] sm:$0xff]  ;;  %vm55_vm1 = vcmask 392192   ;;  %s249_s24 = smov [#allocation7]  }
  0x1c   :  { %156 = vmatpush3.msra.mxu0 %v47_v1  ;;  %v42_v6 = vld [vmem:[#allocation5] sm:$0xff]  ;;  %v41_v7 = vld [vmem:[#allocation2] sm:$0xff]  ;;  %s136_s25 = sshll.u32 %s249_s24, 4  ;;  %s137_s25 = int_to_ptr.vmem [resolvable:$true] %s136_s25 }
  0x1d   :  { %157 = vmatprep.subr.mxu0 %v247_v0  ;;  %v146_v8 = vld [vmem:[%s284_s2] ss:$0 sm:$0xff]  ;;  %s217_s26 = scalar_lea.vmem %s137_s25, 128  ;;  %p222_p11 = scmp.lt.s32.totalorder %s137_s25, %s137_s25 }
  0x1e   :  { %158 = vmatpush3.msra.mxu0 %v46_v2  ;;  %p218_p10 = scmp.ne.s32.totalorder %s137_s25, %s217_s26  ;;  %p223_p12 = scmp.lt.s32.totalorder %s217_s26, %s217_s26 }
  0x1f   :  { %159 = vmatprep.subr.mxu0 %v247_v0 }
  0x20   :  { %160 = vmatpush3.msra.mxu0 %v45_v3  ;;  %p224_p13 = por %p223_p12, %p222_p11 }
  0x21   :  { %161 = vmatprep.subr.mxu0 %v247_v0 }
  0x22   :  { %162 = vmatpush3.msra.mxu0 %v44_v4  ;;  %p225_p0 = pnand %p224_p13, %p218_p10 }
  0x23   :  { %163 = vmatprep.subr.mxu0 %v247_v0 }
  0x24   :  { %164 = vmatpush3.msra.mxu0 %v43_v5 }
  0x25   :  { %165 = vmatprep.subr.mxu0 %v247_v0 }
  0x26   :  { %166 = vmatpush3.msra.mxu0 %v42_v6 }
  0x27   :  { %168 = vmatmul.mubr.msk.f32.vlgmr.msra.gmra.mxu0 %vm55_vm1, %v41_v7 }
  0xe7   :  { %v125_v9 = vpop.f32.mrf.mxu0 }
  0xe8   :  { %v126_v10 = vadd.f32 %v146_v8, %v125_v9 }
  0xe9   :  { %v169_v11 = vpop.f32.mrf.mxu0 }
  0xea   :  { %129 = vst [vmem:[#allocation7] sm:$0xff] %v126_v10 }
  0xeb   :  { %228 = shalt.err (!%p225_p0)
}
  0xec   :  { %139 = dma.vmem_to_hbm [thread:$0]  %s137_s25, 128, %s285_s3, [#allocation4]  }
  0xed   :  { %241 = dma.done.wait [#allocation4], 128  }
  0xee   :  { %242 = vsyncadd [#allocation4], 4294967168 }
  0xef   :  { %143 = vsyncpa [#allocation3], 1 }
  0xf0   :  { %144 = vsyncpa [#allocation6], 1 }
  0xf1   :  { %145 = vsyncpa [#allocation4], 1 }

</bundles_post_ra>
